<compile_context>
chip_gen: v6e
topology: v6e:2x2x1
jax: 0.10.0
libtpu: 0.0.40
codegen_flags: <defaults>
</compile_context>

<pallas_src>
import functools

import numpy as np
import jax
import jax.numpy as jnp
from jax.experimental import pallas as pl
from jax.experimental.pallas import tpu as pltpu


def _vmem_capacity_bytes():
    """Physical VMEM per core; conservative fallback if the query fails."""
    try:
        cap = getattr(pltpu.get_tpu_info(), "vmem_capacity_bytes", None)
        if cap:
            return int(cap)
    except Exception:
        pass
    return 64 * 1024 * 1024  # v7x-sized fallback: safe on every generation


def _pick_batch_tile(B, D, F, c_pad, p_out, out_size, in_bytes, out_bytes, budget):
    """Largest legal batch tile whose working set fits in `budget` bytes."""
    # Per-row footprint: x/y/out tiles are double-buffered by the pipeline,
    # plus the main in-kernel temporaries (T, Z, flattened Z, Zflat).
    row = 2 * (D + F * D) * in_bytes            # x + y input tiles
    row += 2 * out_size * out_bytes             # output tile
    row += c_pad * D * in_bytes                 # T assembled in VMEM/vregs
    row += 2 * c_pad * c_pad * 4                # Z and its flattened copy (f32)
    row += p_out * 4                            # Zflat
    fixed = 2 * c_pad * c_pad * p_out * 4       # selection matrix (f32, 2 bufs)
    cap = max((budget - fixed) // row, 1)
    if B >= 16:
        cap = min(cap, B // 2)   # keep >= 2 grid steps (v7x megacore split)
    cap = min(cap, B)
    for cand in range(cap, 0, -1):              # largest multiple-of-8 divisor
        if B % cand == 0 and cand % 8 == 0:
            return cand
    return B                                    # full batch: always a legal block


def _interaction_kernel(x_ref, y_ref, sel_ref, o_ref, *, c, c_pad, mxu_dtype):
    # x_ref:   (TB, D)                dense features
    # y_ref:   (TB, F, D)             embedding features
    # sel_ref: (c_pad**2, P + pad)    static 0/1 lower-triangle selection
    # o_ref:   (TB, D + P + pad)      output tile
    x = x_ref[...]
    y = y_ref[...]
    tb, d = x.shape

    xin = x if mxu_dtype is None else x.astype(mxu_dtype)
    yin = y if mxu_dtype is None else y.astype(mxu_dtype)

    # Assemble T = [x; y; 0-pad] in VMEM (never materialised in HBM).
    parts = [xin[:, None, :], yin]
    if c_pad > c:
        parts.append(jnp.zeros((tb, c_pad - c, d), xin.dtype))
    t = jnp.concatenate(parts, axis=1)                        # (TB, c_pad, D)

    # Pairwise dot products on the MXU, native-dtype operands, f32 accumulation.
    z = jnp.einsum("bcd,bed->bce", t, t,
                   preferred_element_type=jnp.float32)        # (TB, c_pad, c_pad)

    # Lower-triangle extraction (+ trailing output zero-padding) fused into one
    # matmul with a static 0/1 selection matrix -> no cross-lane gathers.
    zflat = jnp.dot(z.reshape(tb, c_pad * c_pad), sel_ref[...],
                    preferred_element_type=jnp.float32)       # (TB, P + pad)

    o_ref[...] = jnp.concatenate(
        [x.astype(o_ref.dtype), zflat.astype(o_ref.dtype)], axis=-1)


def interaction(x, y, *, interaction_itself=False, interaction_padding=True,
                batch_tile=None, mxu_dtype=None):
    """Pallas TPU implementation of the DLRM `Interaction` forward pass.

    x: (B, D) dense features; y: (B, F, D) embeddings.  Pass bf16 inputs to
    halve HBM traffic / double MXU rate, or set `mxu_dtype=jnp.bfloat16` to
    down-cast f32 inputs just before the pairwise-dot matmul.
    """
    B, D = x.shape
    By, F, Dy = y.shape
    assert B == By and D == Dy, "dense dim must equal embedding dim"
    assert F >= 1

    C = F + 1
    offset = 1 if interaction_itself else 0
    # NOTE: pair ordering matches the reference DLRM interaction:
    # row-major over i, then j < i (plus the diagonal when self-interacting).
    pairs = [(i, j) for i in range(C) for j in range(i + offset)]
    P = len(pairs)

    out_raw = D + P
    out_size = (-(-out_raw // 8) * 8) if interaction_padding else out_raw
    p_out = out_size - D      # = P + output_padding (zero cols folded into sel)

    # Pad the interaction axis to a sublane multiple so Z tiles cleanly and the
    # (TB, c_pad, c_pad) -> (TB, c_pad*c_pad) flatten stays regular.
    c_pad = -(-C // 8) * 8

    sel_np = np.zeros((c_pad * c_pad, p_out), dtype=np.float32)
    for k, (i, j) in enumerate(pairs):
        sel_np[i * c_pad + j, k] = 1.0
    sel = jnp.asarray(sel_np)      # kept f32 so the extraction stays exact

    in_bytes = x.dtype.itemsize
    vmem_cap = _vmem_capacity_bytes()
    vmem_limit = int(min(vmem_cap * 3 // 4, 96 * 1024 * 1024))
    tile_budget = int(vmem_limit * 0.6)   # headroom for compiler scratch/spills

    if batch_tile is None:
        TB = _pick_batch_tile(B, D, F, c_pad, p_out, out_size,
                              in_bytes, in_bytes, tile_budget)
    else:
        TB = batch_tile
        assert B % TB == 0 and (TB % 8 == 0 or TB == B)

    kernel = functools.partial(_interaction_kernel, c=C, c_pad=c_pad,
                               mxu_dtype=mxu_dtype)

    return pl.pallas_call(
        kernel,
        out_shape=jax.ShapeDtypeStruct((B, out_size), x.dtype),
        grid_spec=pltpu.PrefetchScalarGridSpec(
            num_scalar_prefetch=0,
            grid=(B // TB,),
            in_specs=[
                pl.BlockSpec((TB, D), lambda b: (b, 0)),
                # TODO(synk): consider pipeline_mode=pl.Buffered(3) on this
                # (largest) input if a profile still shows exposed DMA.
                pl.BlockSpec((TB, F, D), lambda b: (b, 0, 0)),
                pl.BlockSpec((c_pad * c_pad, p_out), lambda b: (0, 0)),
            ],
            out_specs=pl.BlockSpec((TB, out_size), lambda b: (b, 0)),
        ),
        compiler_params=pltpu.CompilerParams(
            dimension_semantics=("parallel",),
            vmem_limit_bytes=vmem_limit,
        ),
    )(x, y, sel)


def _reference(x, y, *, interaction_itself=False, interaction_padding=True):
    B, D = x.shape
    _, F, _ = y.shape
    C = F + 1
    offset = 1 if interaction_itself else 0
    t = jnp.concatenate([x[:, None, :], y], axis=1)
    z = jnp.einsum("bcd,bed->bce", t, t)
    idx = np.array([(i, j) for i in range(C) for j in range(i + offset)])
    zflat = z[:, idx[:, 0], idx[:, 1]]
    out_raw = D + zflat.shape[1]
    out_size = ((out_raw + 7) // 8 * 8) if interaction_padding else out_raw
    pad = out_size - out_raw
    return jnp.concatenate([x, zflat, jnp.zeros((B, pad), x.dtype)], axis=1)


if __name__ == "__main__":
    key = jax.random.PRNGKey(0)
    kx, ky, ky2 = jax.random.split(key, 3)

    # Config 1: module defaults (dense dim 16 == embedding dim, 7 fields, B=8).
    B, D, F = 8, 16, 7
    x = jax.random.normal(kx, (B, D), dtype=jnp.float32)
    y = jax.random.normal(ky, (B, F, D), dtype=jnp.float32)
    out = jax.block_until_ready(interaction(x, y))
    ref = _reference(x, y)
    np.testing.assert_allclose(np.asarray(out), np.asarray(ref),
                               rtol=1e-5, atol=1e-5)

    # Config 2: self-interaction + a field count that exercises the in-kernel
    # zero-padding of the interaction axis (C = 7 -> padded to 8).
    F2 = 6
    y2 = jax.random.normal(ky2, (B, F2, D), dtype=jnp.float32)
    out2 = jax.block_until_ready(interaction(x, y2, interaction_itself=True))
    ref2 = _reference(x, y2, interaction_itself=True)
    np.testing.assert_allclose(np.asarray(out2), np.asarray(ref2),
                               rtol=1e-5, atol=1e-5)

    print("KERNEL_OK")
</pallas_src>

<mosaic_0001>
module attributes {stable_mosaic.version = 11 : i64} {
  func.func @_interaction_kernel(%arg0: i32, %arg1: memref<8x16xf32, #tpu.memory_space<vmem>>, %arg2: memref<8x7x16xf32, #tpu.memory_space<vmem>>, %arg3: memref<64x32xf32, #tpu.memory_space<vmem>>, %arg4: memref<8x48xf32, #tpu.memory_space<vmem>>) attributes {dimension_semantics = [#tpu.dimension_semantics<parallel>], iteration_bounds = array<i64: 1>, scalar_prefetch = 0 : i64, scratch_operands = 0 : i64, tpu.core_type = #tpu.core_type<tc>, window_params = [{transform_indices = @transform_0, window_bounds = array<i64: 8, 16>}, {transform_indices = @transform_1, window_bounds = array<i64: 8, 7, 16>}, {pipeline_mode = #tpu.pipeline_mode<synchronous>, transform_indices = @transform_2, window_bounds = array<i64: 64, 32>}, {transform_indices = @transform_3, window_bounds = array<i64: 8, 48>}]} {
    %c0 = arith.constant 0 : index
    %c0_0 = arith.constant 0 : index
    %0 = vector.load %arg1[%c0, %c0_0] : memref<8x16xf32, #tpu.memory_space<vmem>>, vector<8x16xf32>
    %c0_1 = arith.constant 0 : index
    %c0_2 = arith.constant 0 : index
    %c0_3 = arith.constant 0 : index
    %1 = vector.load %arg2[%c0_1, %c0_2, %c0_3] : memref<8x7x16xf32, #tpu.memory_space<vmem>>, vector<8x7x16xf32>
    %2 = vector.shape_cast %0 : vector<8x16xf32> to vector<8x1x16xf32>
    %3 = tpu.concatenate %2, %1 in 1 : vector<8x1x16xf32>, vector<8x7x16xf32> -> vector<8x8x16xf32>
    "tpu.trace_start"() <{level = 10 : i32, message = "bcd,bed->bce"}> : () -> ()
    %cst = arith.constant dense<0.000000e+00> : vector<8x8x8xf32>
    %4 = tpu.matmul %3, %3, %cst {dimension_numbers = #tpu.dot_dimension_numbers<[2], [2], [1], [1], [0, 0, 0, 1, 1, 1], [0], [0]>} : vector<8x8x16xf32>, vector<8x8x16xf32>, vector<8x8x8xf32> -> vector<8x8x8xf32>
    "tpu.trace_stop"() : () -> ()
    %5 = vector.shape_cast %4 : vector<8x8x8xf32> to vector<8x64xf32>
    %c0_4 = arith.constant 0 : index
    %c0_5 = arith.constant 0 : index
    %6 = vector.load %arg3[%c0_4, %c0_5] : memref<64x32xf32, #tpu.memory_space<vmem>>, vector<64x32xf32>
    %cst_6 = arith.constant dense<0.000000e+00> : vector<8x32xf32>
    %7 = tpu.matmul %5, %6, %cst_6 {dimension_numbers = #tpu.dot_dimension_numbers<[1], [0], [0], [1], [0, 0, 1, 1], [], []>} : vector<8x64xf32>, vector<64x32xf32>, vector<8x32xf32> -> vector<8x32xf32>
    %8 = tpu.concatenate %0, %7 in 1 : vector<8x16xf32>, vector<8x32xf32> -> vector<8x48xf32>
    %c0_7 = arith.constant 0 : index
    %c0_8 = arith.constant 0 : index
    %9 = vector.load %arg4[%c0_7, %c0_8] : memref<8x48xf32, #tpu.memory_space<vmem>>, vector<8x48xf32>
    tpu.vector_store %arg4[%c0_7, %c0_8], %8 {strides = array<i32>} : memref<8x48xf32, #tpu.memory_space<vmem>>, vector<8x48xf32>,
    return
  }
  func.func @transform_0(%arg0: i32) -> (i32, i32) {
    %c0_i32 = arith.constant 0 : i32
    %c0_i32_0 = arith.constant 0 : i32
    return %arg0, %c0_i32 : i32, i32
  }
  func.func @transform_1(%arg0: i32) -> (i32, i32, i32) {
    %c0_i32 = arith.constant 0 : i32
    %c0_i32_0 = arith.constant 0 : i32
    %c0_i32_1 = arith.constant 0 : i32
    return %arg0, %c0_i32, %c0_i32_0 : i32, i32, i32
  }
  func.func @transform_2(%arg0: i32) -> (i32, i32) {
    %c0_i32 = arith.constant 0 : i32
    %c0_i32_0 = arith.constant 0 : i32
    %c0_i32_1 = arith.constant 0 : i32
    return %c0_i32, %c0_i32_0 : i32, i32
  }
  func.func @transform_3(%arg0: i32) -> (i32, i32) {
    %c0_i32 = arith.constant 0 : i32
    %c0_i32_0 = arith.constant 0 : i32
    return %arg0, %c0_i32 : i32, i32
  }
}

</mosaic_0001>

<bundles_post_ra>
// kernel: tpu_custom_call.1
= control target key start
LH: loop header
LB: loop body
LE: loop exit
PB: predicated region body
PF: predicated region fallthrough
CT: control target
= control target key end

     0   :  { %v29_v0 = vlaneseq  ;;  %v1116_v1 = vmov 0.0   ;;  %v1117_v2 = vmov 1966171168   ;;  %vm1118_vm0 = vmmov 0   ;;  %s1276_s0 = inlined_call_operand.vmem [shape: f32[8,16], index: 0, kind: input, shape index: {}]   ;;  %s1277_s1 = inlined_call_operand.vmem [shape: f32[8,7,16], index: 1, kind: input, shape index: {}]   ;;  %s1278_s2 = inlined_call_operand.vmem [shape: f32[64,32], index: 2, kind: input, shape index: {}]   ;;  %s1279_s3 = inlined_call_operand.hbm [shape: f32[8,48], index: 3, kind: output, shape index: {}]  }
   0x1   :  { %1021 = vmatprep.subr.mxu1 %v1116_v1  ;;  %v27_v3 = vunpack.c.l.s4 %v1117_v2  ;;  %1041 = vmatprep.subr.mxu0 %v1116_v1  ;;  %v1156_v5 = vld [vmem:[%s1276_s0] sm:$0xff]  ;;  %v17_v11 = vld [vmem:[%s1277_s1 + $0x8] sm:$0x7f] }
   0x2   :  { %v1151_v4 = vshrl.u32 %v29_v0, 7  ;;  %1023 = vmatprep.mubr.msk.f32.mxu1 %vm1118_vm0, %v1116_v1  ;;  %1043 = vmatprep.mubr.msk.f32.mxu0 %vm1118_vm0, %v1116_v1  ;;  %v16_v7 = vld [vmem:[%s1277_s1] sm:$0x7f]  ;;  %v25_v8 = vcombine.high %v1156_v5, %v1156_v5 }
   0x3   :  { %v28_v6 = vunpack.c.0.s8 %v27_v3  ;;  %v20_v10 = vld [vmem:[%s1277_s1 + $0x20] sm:$0x7f] }
   0x5   :  { %v31_v9 = vsub.s32 %v28_v6, %v1151_v4 }
   0x6   :  { %8 = vsyncpa [#allocation3], 0  ;;  %v90_v13 = vrot.slane %v16_v7, 7  ;;  %vm106_vm1 = vcmask 1040384   ;;  %vm115_vm2 = vcmask 130048   ;;  %v94_v15 = vrot.slane %v20_v10, 7 }
   0x7   :  { %v32_v12 = vrot.slane %v1156_v5, %v31_v9  ;;  %v39_v14 = vrot.slane %v25_v8, %v31_v9  ;;  %v22_v16 = vld [vmem:[%s1277_s1 + $0x30] sm:$0x7f]  ;;  %v91_v19 = vrot.slane %v17_v11, 7  ;;  %v19_v30 = vld [vmem:[%s1277_s1 + $0x18] sm:$0x7f]  ;;  %s1121_s0 = smov 24  }
   0x8   :  { %v18_v21 = vld [vmem:[%s1277_s1 + $0x10] sm:$0x7f]  ;;  %v96_v25 = vrot.slane %v22_v16, 7  ;;  %v93_v34 = vrot.slane %v19_v30, 7  ;;  %v21_v36 = vld [vmem:[%s1277_s1 + $0x28] sm:$0x7f] }
   0x9   :  { %v40_v17 = vcombine.high %v32_v12, %v32_v12  ;;  %v48_v18 = vrot.slane %v32_v12, %v31_v9  ;;  %v55_v20 = vrot.slane %v39_v14, %v31_v9  ;;  %v92_v29 = vrot.slane %v18_v21, 7  ;;  %v23_v40 = vld [vmem:[%s1277_s1 + $0x38] sm:$0x7f]  ;;  %v883_v11 = vld [vmem:[%s1278_s2 + $0x30] sm:$0xff]  ;;  %v882_v12 = vld [vmem:[%s1278_s2 + $0x28] sm:$0xff]  ;;  %s1122_s17 = smov 8  }
   0xa   :  { %v41_v35 = vcombine.high %v39_v14, %v39_v14  ;;  %v95_v39 = vrot.slane %v21_v36, 7  ;;  %v97_v43 = vrot.slane %v23_v40, 7  ;;  %v884_v45 = vld [vmem:[%s1278_s2 + $0x38] sm:$0xff]  ;;  %v1119_v55 = vmov 1983009808   ;;  %s1123_s18 = smov 32  }
   0xb   :  { %v107_v22 = vsel %vm106_vm1, %v48_v18, %v90_v13  ;;  %v62_v23 = vrot.slane %v40_v17, %v31_v9  ;;  %v71_v24 = vcombine.high %v55_v20, %v55_v20  ;;  %v111_v26 = vsel %vm106_vm1, %v55_v20, %v94_v15  ;;  %s1124_s19 = smov 16   ;;  %s1125_s20 = smov 48  }
   0xc   :  { %1022 = vmatpush3.xpose.msk.msra.mxu1 %vm115_vm2, %v107_v22  ;;  %v70_v27 = vcombine.high %v48_v18, %v48_v18  ;;  %1042 = vmatpush3.xpose.msk.msra.mxu0 %vm115_vm2, %v111_v26  ;;  %v69_v38 = vrot.slane %v41_v35, %v31_v9  ;;  %v703_v56 = vunpack.c.l.s4 %v1119_v55  ;;  %v1120_v60 = vmov 1934713408   ;;  %v878_v35 = vld [vmem:[%s1278_s2 + $0x8] sm:$0xff]  ;;  %s1127_s21 = smov 56   ;;  %s1128_s22 = smov [#allocation2]  }
   0xd   :  { %1026 = vmatprep.subr.mxu1 %v1116_v1  ;;  %v108_v28 = vsel %vm106_vm1, %v62_v23, %v91_v19  ;;  %1051 = vmatprep.subr.mxu0 %v1116_v1  ;;  %v113_v31 = vsel %vm106_vm1, %v71_v24, %v96_v25  ;;  %v72_v33 = vcombine.high %v62_v23, %v62_v23  ;;  %v767_v61 = vunpack.c.l.s4 %v1120_v60  ;;  %v881_v24 = vld [vmem:[%s1278_s2 + $0x20] sm:$0xff]  ;;  %s971_s23 = sshll.u32 %s1128_s22, 4  ;;  %s972_s23 = int_to_ptr.vmem [resolvable:$true] %s971_s23 }
   0xe   :  { %v109_v32 = vsel %vm106_vm1, %v70_v27, %v92_v29  ;;  %v112_v41 = vsel %vm106_vm1, %v69_v38, %v95_v39  ;;  %v73_v42 = vcombine.high %v69_v38, %v69_v38  ;;  %v704_v59 = vunpack.c.0.s8 %v703_v56  ;;  %v880_v29 = vld [vmem:[%s1278_s2 + $0x18] sm:$0xff]  ;;  %s1094_s24 = scalar_lea.vmem %s972_s23, 128  ;;  %p1099_p1 = scmp.lt.s32.totalorder %s972_s23, %s972_s23 }
   0xf   :  { %1024 = vmatmul.mubr.msk.f32.vlgmr.msra.gmra.mxu1 %vm115_vm2, %v107_v22  ;;  %1044 = vmatmul.mubr.msk.f32.vlgmr.msra.gmra.mxu0 %vm115_vm2, %v111_v26  ;;  %v110_v37 = vsel %vm106_vm1, %v72_v33, %v93_v34  ;;  %v768_v6 = vunpack.c.0.s8 %v767_v61  ;;  %v879_v34 = vld [vmem:[%s1278_s2 + $0x10] sm:$0xff]  ;;  %vm864_vm3 = vcmask 64512   ;;  %vm867_vm4 = vcmask 195584   ;;  %p1095_p0 = scmp.ne.s32.totalorder %s972_s23, %s1094_s24  ;;  %p1100_p2 = scmp.lt.s32.totalorder %s1094_s24, %s1094_s24 }
  0x10   :  { %1027 = vmatpush3.xpose.msk.msra.mxu1 %vm115_vm2, %v108_v28  ;;  %1028 = vmatprep.mubr.msk.f32.mxu1 %vm1118_vm0, %v1116_v1  ;;  %v114_v44 = vsel %vm106_vm1, %v73_v42, %v97_v43  ;;  %v707_v2 = vsub.s32 %v704_v59, %v1151_v4  ;;  %vm869_vm5 = vcmask 261120   ;;  %vm871_vm6 = vcmask 326656  }
  0x11   :  { %1031 = vmatprep.subr.mxu1 %v1116_v1  ;;  %1052 = vmatpush3.xpose.msk.msra.mxu0 %vm115_vm2, %v113_v31  ;;  %v771_v19 = vsub.s32 %v768_v6, %v1151_v4  ;;  %vm873_vm7 = vcmask 392192   ;;  %vm875_vm8 = vcmask 457728   ;;  %vm885_vm9 = vcmask 523264   ;;  %p1101_p3 = por %p1100_p2, %p1099_p1 }
  0x12   :  { %1053 = vmatprep.mubr.msk.f32.mxu0 %vm1118_vm0, %v1116_v1  ;;  %1061 = vmatprep.subr.mxu0 %v1116_v1 }
  0x13   :  { %1029 = vmatmul.mubr.msk.f32.vlgmr.msra.gmra.mxu1 %vm115_vm2, %v108_v28  ;;  %p1102_p4 = pnand %p1101_p3, %p1095_p0 }
  0x14   :  { %1032 = vmatpush3.xpose.msk.msra.mxu1 %vm115_vm2, %v109_v32  ;;  %1033 = vmatprep.mubr.msk.f32.mxu1 %vm1118_vm0, %v1116_v1 }
  0x15   :  { %1036 = vmatprep.subr.mxu1 %v1116_v1  ;;  %1054 = vmatmul.mubr.msk.f32.vlgmr.msra.gmra.mxu0 %vm115_vm2, %v113_v31 }
  0x16   :  { %1077 = vmatprep.mubr.msk.f32.mxu0 %vm1118_vm0, %v1116_v1  ;;  %1062 = vmatpush3.msra.mxu0 %v884_v45  ;;  %v877_v45 = vld [vmem:[%s1278_s2] sm:$0xff]  ;;  %s1126_s2 = smov 40  }
  0x17   :  { %1034 = vmatmul.mubr.msk.f32.vlgmr.msra.gmra.mxu1 %vm115_vm2, %v109_v32  ;;  %1063 = vmatprep.subr.mxu0 %v1116_v1 }
  0x18   :  { %1037 = vmatpush3.xpose.msk.msra.mxu1 %vm115_vm2, %v110_v37  ;;  %1038 = vmatprep.mubr.msk.f32.mxu1 %vm1118_vm0, %v1116_v1 }
  0x19   :  { %1046 = vmatprep.subr.mxu1 %v1116_v1  ;;  %1064 = vmatpush3.msra.mxu0 %v883_v11 }
  0x1a   :  { %1065 = vmatprep.subr.mxu0 %v1116_v1 }
  0x1b   :  { %1039 = vmatmul.mubr.msk.f32.vlgmr.msra.gmra.mxu1 %vm115_vm2, %v110_v37  ;;  %1066 = vmatpush3.msra.mxu0 %v882_v12 }
  0x1c   :  { %1047 = vmatpush3.xpose.msk.msra.mxu1 %vm115_vm2, %v112_v41  ;;  %1048 = vmatprep.mubr.msk.f32.mxu1 %vm1118_vm0, %v1116_v1 }
  0x1d   :  { %1056 = vmatprep.subr.mxu1 %v1116_v1  ;;  %1067 = vmatprep.subr.mxu0 %v1116_v1 }
  0x1e   :  { %1068 = vmatpush3.msra.mxu0 %v881_v24 }
  0x1f   :  { %1049 = vmatmul.mubr.msk.f32.vlgmr.msra.gmra.mxu1 %vm115_vm2, %v112_v41  ;;  %1069 = vmatprep.subr.mxu0 %v1116_v1 }
  0x20   :  { %1057 = vmatpush3.xpose.msk.msra.mxu1 %vm115_vm2, %v114_v44  ;;  %1058 = vmatprep.mubr.msk.f32.mxu1 %vm1118_vm0, %v1116_v1 }
  0x21   :  { %1070 = vmatpush3.msra.mxu0 %v880_v29 }
  0x22   :  { %1071 = vmatprep.subr.mxu0 %v1116_v1 }
  0x23   :  { %1059 = vmatmul.mubr.msk.f32.vlgmr.msra.gmra.mxu1 %vm115_vm2, %v114_v44  ;;  %1072 = vmatpush3.msra.mxu0 %v879_v34 }
  0x24   :  { %1073 = vmatprep.subr.mxu0 %v1116_v1 }
  0x25   :  { %1074 = vmatpush3.msra.mxu0 %v878_v35 }
  0x26   :  { %1075 = vmatprep.subr.mxu0 %v1116_v1 }
  0x27   :  { %1076 = vmatpush3.msra.mxu0 %v877_v45 }
  0xcf   :  { %v185_v46 = vpop.f32.mrf.mxu1  ;;  %v477_v48 = vpop.f32.mrf.mxu0 }
  0xd1   :  { %v1025_v47 = vpop.f32.mrf.mxu1  ;;  %v1045_v50 = vpop.f32.mrf.mxu0 }
  0xd3   :  { %v258_v49 = vpop.f32.mrf.mxu1 }
  0xd5   :  { %v1030_v51 = vpop.f32.mrf.mxu1  ;;  %v623_v52 = vpop.f32.mrf.mxu0 }
  0xd6   :  { %v732_v8 = vcombine.low %v477_v48, %v623_v52  ;;  %v733_v9 = vcombine.high %v477_v48, %v623_v52 }
  0xd7   :  { %v331_v53 = vpop.f32.mrf.mxu1  ;;  %v1055_v54 = vpop.f32.mrf.mxu0 }
  0xd8   :  { %v700_v3 = vcombine.low %v185_v46, %v331_v53  ;;  %v701_v14 = vcombine.high %v185_v46, %v331_v53  ;;  %v740_v21 = vrot.slane %v732_v8, %v707_v2  ;;  %v747_v22 = vrot.slane %v733_v9, %v707_v2 }
  0xd9   :  { %v1035_v57 = vpop.f32.mrf.mxu1 }
  0xda   :  { %v708_v16 = vrot.slane %v700_v3, %v707_v2  ;;  %v715_v4 = vrot.slane %v701_v14, %v707_v2 }
  0xdb   :  { %v404_v58 = vpop.f32.mrf.mxu1 }
  0xdc   :  { %v716_v63 = vcombine.low %v258_v49, %v404_v58  ;;  %v717_v7 = vcombine.high %v258_v49, %v404_v58 }
  0xdd   :  { %v1040_v62 = vpop.f32.mrf.mxu1 }
  0xde   :  { %v724_v13 = vrot.slane %v716_v63, %v707_v2  ;;  %v731_v20 = vrot.slane %v717_v7, %v707_v2 }
  0xdf   :  { %v550_v0 = vpop.f32.mrf.mxu1 }
  0xe0   :  { %v765_v27 = vcombine.high %v708_v16, %v724_v13  ;;  %v764_v28 = vcombine.low %v708_v16, %v724_v13  ;;  %v780_v33 = vcombine.low %v715_v4, %v731_v20  ;;  %v781_v46 = vcombine.high %v715_v4, %v731_v20 }
  0xe1   :  { %v1050_v10 = vpop.f32.mrf.mxu1 }
  0xe2   :  { %v779_v36 = vrot.slane %v765_v27, %v771_v19  ;;  %v772_v38 = vrot.slane %v764_v28, %v771_v19  ;;  %v788_v47 = vrot.slane %v780_v33, %v771_v19  ;;  %v795_v1 = vrot.slane %v781_v46, %v771_v19 }
  0xe3   :  { %v696_v15 = vpop.f32.mrf.mxu1 }
  0xe4   :  { %v748_v17 = vcombine.low %v550_v0, %v696_v15  ;;  %v749_v18 = vcombine.high %v550_v0, %v696_v15 }
  0xe5   :  { %v1060_v23 = vpop.f32.mrf.mxu1 }
  0xe6   :  { %v756_v25 = vrot.slane %v748_v17, %v707_v2  ;;  %v763_v26 = vrot.slane %v749_v18, %v707_v2 }
  0xe8   :  { %v812_v30 = vcombine.low %v747_v22, %v763_v26  ;;  %v797_v31 = vcombine.high %v740_v21, %v756_v25  ;;  %v796_v32 = vcombine.low %v740_v21, %v756_v25  ;;  %v813_v40 = vcombine.high %v747_v22, %v763_v26 }
  0xea   :  { %v811_v37 = vrot.slane %v797_v31, %v771_v19  ;;  %v804_v39 = vrot.slane %v796_v32, %v771_v19  ;;  %v820_v44 = vrot.slane %v812_v30, %v771_v19  ;;  %v827_v50 = vrot.slane %v813_v40, %v771_v19 }
  0xec   :  { %v831_v41 = vcombine.high %v779_v36, %v811_v37  ;;  %v829_v42 = vcombine.high %v772_v38, %v804_v39  ;;  %v828_v43 = vcombine.low %v772_v38, %v804_v39  ;;  %v832_v48 = vcombine.low %v788_v47, %v820_v44 }
  0xed   :  { %v830_v49 = vcombine.low %v779_v36, %v811_v37  ;;  %v834_v51 = vcombine.low %v795_v1, %v827_v50  ;;  %v833_v52 = vcombine.high %v788_v47, %v820_v44  ;;  %v835_v53 = vcombine.high %v795_v1, %v827_v50 }
  0xee   :  { %845 = vrot.lane.b32.xlu1 %v831_v41, %s1121_s0  ;;  %837 = vrot.lane.b32.xlu0 %v829_v42, %s1122_s17 }
  0xf2   :  { %849 = vrot.lane.b32.xlu1 %v832_v48, %s1123_s18  ;;  %841 = vrot.lane.b32.xlu0 %v830_v49, %s1124_s19 }
  0xf6   :  { %857 = vrot.lane.b32.xlu1 %v834_v51, %s1125_s20  ;;  %853 = vrot.lane.b32.xlu0 %v833_v52, %s1126_s2 }
  0xfa   :  { %861 = vrot.lane.b32.xlu0 %v835_v53, %s1127_s21 }
 0x160   :  { %v846_v54 = vpop.permute.xlu1 %845  ;;  %v838_v55 = vpop.permute.xlu0 %837 }
 0x161   :  { %v865_v56 = vsel %vm864_vm3, %v828_v43, %v838_v55 }
 0x164   :  { %v850_v57 = vpop.permute.xlu1 %849  ;;  %v842_v58 = vpop.permute.xlu0 %841 }
 0x165   :  { %v866_v59 = vsel %vm115_vm2, %v865_v56, %v842_v58 }
 0x166   :  { %v868_v60 = vsel %vm867_vm4, %v866_v59, %v846_v54 }
 0x167   :  { %v870_v61 = vsel %vm869_vm5, %v868_v60, %v850_v57 }
 0x168   :  { %v854_v62 = vpop.permute.xlu0 %853  ;;  %v858_v63 = vpop.permute.xlu1 %857 }
 0x169   :  { %v872_v0 = vsel %vm871_vm6, %v870_v61, %v854_v62 }
 0x16a   :  { %v874_v3 = vsel %vm873_vm7, %v872_v0, %v858_v63 }
 0x16c   :  { %v862_v2 = vpop.permute.xlu0 %861 }
 0x16d   :  { %v876_v6 = vsel %vm875_vm8, %v874_v3, %v862_v2 }
 0x16e   :  { %1078 = vmatmul.mubr.msk.f32.vlgmr.msra.gmra.mxu0 %vm885_vm9, %v876_v6 }
 0x22e   :  { %v955_v7 = vpop.f32.mrf.mxu0 }
 0x22f   :  { %960 = vrot.lane.b32.xlu1 %v955_v7, %s1124_s19 }
 0x230   :  { %v1079_v8 = vpop.f32.mrf.mxu0 }
 0x2a1   :  { %v961_v9 = vpop.permute.xlu1 %960 }
 0x2a2   :  { %v963_v10 = vsel %vm115_vm2, %v1156_v5, %v961_v9 }
 0x2a3   :  { %964 = vst.msk [vmem:[#allocation2] sm:$0xff] %vm873_vm7, %v963_v10 }
 0x2a4   :  { %1105 = shalt.err (!%p1102_p4)
}
 0x2a5   :  { %974 = dma.vmem_to_hbm [thread:$0]  %s972_s23, 128, %s1279_s3, [#allocation3]  }
 0x2a6   :  { %1114 = dma.done.wait [#allocation3], 128  }
 0x2a7   :  { %1115 = vsyncadd [#allocation3], 4294967168 }
 0x2a8   :  { %978 = vsyncpa [#allocation3], 1 }

</bundles_post_ra>
